<compile_context>
chip_gen: v5e
topology: v5e:2x2
jax: 0.10.0
libtpu: 0.0.40
codegen_flags: <defaults>
</compile_context>

<pallas_src>
import functools

import jax
import jax.numpy as jnp
from jax.experimental import pallas as pl
from jax.experimental.pallas import tpu as pltpu


def fm_kernel(w0_ref, x_ref, w_ref, s_ref, out_ref, *, latent_dim):
    # w0_ref : (1,)      SMEM  global bias
    # x_ref  : (TB, F)   VMEM  batch tile of inputs (streamed / double-buffered)
    # w_ref  : (F, D+1)  VMEM  [w2 | w1]  (first-order folded into the matmul)
    # s_ref  : (1, F)    VMEM  0.5 * sum_d w2[f, d]^2
    # out_ref: (1, TB)   VMEM  lane-dense output row
    x = x_ref[...]
    xf = x.astype(jnp.float32)  # no-op when inputs are already f32

    # Single MXU matmul; last column is x @ w1 for free (output lane-padded).
    xv = jnp.dot(x, w_ref[...], preferred_element_type=jnp.float32)   # (TB, D+1)
    v = xv[:, :latent_dim]                                            # x @ w2
    lin = xv[:, latent_dim]                                           # x @ w1  (TB,)

    quad = 0.5 * jnp.sum(v * v, axis=-1)                              # (TB,)
    # sum_d((x^2 @ w2^2)_d) == x^2 . sum_d(w2^2): fused VPU mul + one lane reduce
    sq = jnp.sum((xf * xf) * s_ref[...], axis=-1)                     # (TB,)

    total = w0_ref[0] + lin + quad - sq                               # (TB,)
    out_ref[...] = total[None, :].astype(out_ref.dtype)               # (1, TB)


def _ceil_div(a, b):
    return -(-a // b)


def _vmem_capacity_bytes():
    """Generation-aware VMEM capacity; conservative fallback = v7x (64 MiB)."""
    try:
        return int(pltpu.get_tpu_info().vmem_capacity_bytes)
    except Exception:
        return 64 << 20


def _plan_batch_tiling(B, F, itemsize, vmem_cap):
    """Return (batch_tile, padded_B).

    * x blocks target ~1-4 MiB (amortize per-grid-step fixed cost) while the
      double-buffered x stream stays well inside the scoped VMEM budget.
    * For B >= 256, guarantee >= 2 grid steps so megacore chips (v7x: 2 TCs)
      can shard the "parallel" axis and the input actually pipelines.
    * B is padded up to a multiple of the (128-aligned) tile, so there is no
      full-batch fallback for awkward B.
    """
    if B < 256:
        return B, B                                    # single full-batch block
    row_bytes = max(1, F * itemsize)
    max_block_bytes = max(128 * row_bytes, vmem_cap // 8)   # per x buffer
    target_block_bytes = min(4 << 20, max_block_bytes)
    tile = max(128, (target_block_bytes // row_bytes) // 128 * 128)
    num_steps = max(2, _ceil_div(B, tile))
    tile = _ceil_div(_ceil_div(B, num_steps), 128) * 128
    return tile, num_steps * tile


def fm_forward(x, w0, w1, w2, *, batch_tile=None):
    B, F = x.shape
    Fd, D = w2.shape
    assert Fd == F and w1.shape == (F, 1)
    itemsize = x.dtype.itemsize

    vmem_cap = _vmem_capacity_bytes()
    if batch_tile is None:
        batch_tile, padded_B = _plan_batch_tiling(B, F, itemsize, vmem_cap)
    else:
        padded_B = _ceil_div(B, batch_tile) * batch_tile

    xp = x if padded_B == B else jnp.pad(x, ((0, padded_B - B), (0, 0)))

    # Grid-invariant precomputation (tiny, done once in the wrapper).
    w0_s = jnp.asarray(w0, jnp.float32).reshape(1)                      # SMEM scalar
    w_cat = jnp.concatenate([w2, w1], axis=1).astype(x.dtype)           # (F, D+1)
    s_row = (0.5 * jnp.sum(w2.astype(jnp.float32) ** 2, axis=1)).reshape(1, F)

    grid = (padded_B // batch_tile,)
    # Explicit scoped-VMEM limit: >= default on all gens, < physical on v7x.
    vmem_limit = max(32 << 20, min(vmem_cap * 3 // 4, 96 << 20))

    kernel = functools.partial(fm_kernel, latent_dim=D)
    out_row = pl.pallas_call(
        kernel,
        out_shape=jax.ShapeDtypeStruct((1, padded_B), jnp.float32),
        grid_spec=pltpu.PrefetchScalarGridSpec(
            num_scalar_prefetch=0,
            grid=grid,
            in_specs=[
                pl.BlockSpec(memory_space=pltpu.MemorySpace.SMEM),     # w0 scalar
                pl.BlockSpec((batch_tile, F), lambda i: (i, 0)),       # x tile (streamed)
                pl.BlockSpec((F, D + 1), lambda i: (0, 0)),            # [w2|w1] (resident)
                pl.BlockSpec((1, F), lambda i: (0, 0)),                # 0.5*sum(w2^2) row
            ],
            out_specs=pl.BlockSpec((1, batch_tile), lambda i: (0, i)),
        ),
        compiler_params=pltpu.CompilerParams(
            dimension_semantics=("parallel",),
            vmem_limit_bytes=int(vmem_limit),
        ),
        cost_estimate=pl.CostEstimate(
            flops=2 * padded_B * F * (D + 1),
            transcendentals=0,
            bytes_accessed=(padded_B * F * itemsize + padded_B * 4
                            + F * (D + 1) * itemsize + F * 4),
        ),
    )(w0_s, xp, w_cat, s_row)
    return out_row[0, :B].reshape(B, 1)


def fm_reference(x, w0, w1, w2):
    xf = x.astype(jnp.float32)
    first = w0.reshape(1, 1) + xf @ w1
    second = 0.5 * jnp.sum((xf @ w2) ** 2 - (xf ** 2) @ (w2 ** 2),
                           axis=1, keepdims=True)
    return first + second


if __name__ == "__main__":
    key = jax.random.PRNGKey(0)
    kx, k1, k2, kxb, k1b, k2b, kxc, k1c, k2c = jax.random.split(key, 9)

    # --- small case, matching the module's shapes (embed_dim=8) ---
    latent_dim, fea_num, batch = 8, 16, 8
    w0 = jnp.zeros((1,), dtype=jnp.float32)                          # torch.zeros([1])
    w1 = jax.random.uniform(k1, (fea_num, 1), dtype=jnp.float32)     # torch.rand
    w2 = jax.random.uniform(k2, (fea_num, latent_dim), dtype=jnp.float32)
    x = jax.random.normal(kx, (batch, fea_num), dtype=jnp.float32)

    out = jax.block_until_ready(fm_forward(x, w0, w1, w2))
    ref = fm_reference(x, w0, w1, w2)
    assert out.shape == (batch, 1)
    assert jnp.allclose(out, ref, atol=1e-3, rtol=1e-4), (out, ref)

    # --- multi-tile case: exercises the pipelined grid (>=2 steps) ---
    B2, F2, D2 = 2048, 64, 8
    w1b = jax.random.uniform(k1b, (F2, 1), dtype=jnp.float32)
    w2b = jax.random.uniform(k2b, (F2, D2), dtype=jnp.float32)
    xb = jax.random.normal(kxb, (B2, F2), dtype=jnp.float32)

    outb = jax.block_until_ready(fm_forward(xb, w0, w1b, w2b))
    refb = fm_reference(xb, w0, w1b, w2b)
    assert outb.shape == (B2, 1)
    assert jnp.allclose(outb, refb, atol=5e-2, rtol=1e-3)

    # --- awkward batch / DeepFM-like feature count (F = 5 + 15*8 + 16 = 141):
    #     exercises the zero-padding path (B has no 128-aligned divisor). ---
    B3, F3, D3 = 600, 141, 8
    w1c = jax.random.uniform(k1c, (F3, 1), dtype=jnp.float32)
    w2c = jax.random.uniform(k2c, (F3, D3), dtype=jnp.float32)
    xc = jax.random.normal(kxc, (B3, F3), dtype=jnp.float32)

    outc = jax.block_until_ready(fm_forward(xc, w0, w1c, w2c))
    refc = fm_reference(xc, w0, w1c, w2c)
    assert outc.shape == (B3, 1)
    assert jnp.allclose(outc, refc, atol=1e-1, rtol=1e-3)

    print("KERNEL_OK")
</pallas_src>

<mosaic_0001>
module attributes {stable_mosaic.version = 11 : i64} {
  func.func @fm_kernel(%arg0: i32, %arg1: memref<1xf32, #tpu.memory_space<smem>>, %arg2: memref<8x16xf32, #tpu.memory_space<vmem>>, %arg3: memref<16x9xf32, #tpu.memory_space<vmem>>, %arg4: memref<1x16xf32, #tpu.memory_space<vmem>>, %arg5: memref<1x8xf32, #tpu.memory_space<vmem>>) attributes {dimension_semantics = [#tpu.dimension_semantics<parallel>], iteration_bounds = array<i64: 1>, scalar_prefetch = 0 : i64, scratch_operands = 0 : i64, tpu.core_type = #tpu.core_type<tc>, window_params = [{transform_indices = @transform_0, window_bounds = array<i64: 1>}, {transform_indices = @transform_1, window_bounds = array<i64: 8, 16>}, {pipeline_mode = #tpu.pipeline_mode<synchronous>, transform_indices = @transform_2, window_bounds = array<i64: 16, 9>}, {pipeline_mode = #tpu.pipeline_mode<synchronous>, transform_indices = @transform_3, window_bounds = array<i64: 1, 16>}, {transform_indices = @transform_4, window_bounds = array<i64: 1, 8>}]} {
    %c0 = arith.constant 0 : index
    %c0_0 = arith.constant 0 : index
    %0 = vector.load %arg2[%c0, %c0_0] : memref<8x16xf32, #tpu.memory_space<vmem>>, vector<8x16xf32>
    %c0_1 = arith.constant 0 : index
    %c0_2 = arith.constant 0 : index
    %1 = vector.load %arg3[%c0_1, %c0_2] : memref<16x9xf32, #tpu.memory_space<vmem>>, vector<16x9xf32>
    %cst = arith.constant dense<0.000000e+00> : vector<8x9xf32>
    %2 = tpu.matmul %0, %1, %cst {dimension_numbers = #tpu.dot_dimension_numbers<[1], [0], [0], [1], [0, 0, 1, 1], [], []>} : vector<8x16xf32>, vector<16x9xf32>, vector<8x9xf32> -> vector<8x9xf32>
    %3 = vector.extract_strided_slice %2 {offsets = [0, 0], sizes = [8, 8], strides = [1, 1]} : vector<8x9xf32> to vector<8x8xf32>
    %4 = vector.extract_strided_slice %2 {offsets = [0, 8], sizes = [8, 1], strides = [1, 1]} : vector<8x9xf32> to vector<8x1xf32>
    %5 = vector.shape_cast %4 : vector<8x1xf32> to vector<8xf32>
    %6 = arith.mulf %3, %3 : vector<8x8xf32>
    %cst_3 = arith.constant dense<0.000000e+00> : vector<8xf32>
    %7 = vector.multi_reduction <add>, %6, %cst_3 [1] : vector<8x8xf32> to vector<8xf32>
    %cst_4 = arith.constant 5.000000e-01 : f32
    %8 = vector.broadcast %cst_4 : f32 to vector<8xf32>
    %9 = arith.mulf %8, %7 : vector<8xf32>
    %10 = arith.mulf %0, %0 : vector<8x16xf32>
    %c0_5 = arith.constant 0 : index
    %c0_6 = arith.constant 0 : index
    %11 = vector.load %arg4[%c0_5, %c0_6] : memref<1x16xf32, #tpu.memory_space<vmem>>, vector<1x16xf32>
    %12 = vector.broadcast %11 : vector<1x16xf32> to vector<8x16xf32>
    %13 = arith.mulf %10, %12 : vector<8x16xf32>
    %cst_7 = arith.constant dense<0.000000e+00> : vector<8xf32>
    %14 = vector.multi_reduction <add>, %13, %cst_7 [1] : vector<8x16xf32> to vector<8xf32>
    %c0_8 = arith.constant 0 : index
    %15 = memref.load %arg1[%c0_8] : memref<1xf32, #tpu.memory_space<smem>>
    %16 = vector.broadcast %15 : f32 to vector<8xf32>
    %17 = arith.addf %16, %5 : vector<8xf32>
    %18 = arith.addf %17, %9 : vector<8xf32>
    %19 = arith.subf %18, %14 : vector<8xf32>
    %20 = vector.shape_cast %19 : vector<8xf32> to vector<1x8xf32>
    %c0_9 = arith.constant 0 : index
    %c0_10 = arith.constant 0 : index
    %21 = vector.load %arg5[%c0_9, %c0_10] : memref<1x8xf32, #tpu.memory_space<vmem>>, vector<1x8xf32>
    tpu.vector_store %arg5[%c0_9, %c0_10], %20 {strides = array<i32>} : memref<1x8xf32, #tpu.memory_space<vmem>>, vector<1x8xf32>,
    return
  }
  func.func @transform_0(%arg0: i32) -> i32 {
    %c0_i32 = arith.constant 0 : i32
    %c0_i32_0 = arith.constant 0 : i32
    return %c0_i32 : i32
  }
  func.func @transform_1(%arg0: i32) -> (i32, i32) {
    %c0_i32 = arith.constant 0 : i32
    %c0_i32_0 = arith.constant 0 : i32
    return %arg0, %c0_i32 : i32, i32
  }
  func.func @transform_2(%arg0: i32) -> (i32, i32) {
    %c0_i32 = arith.constant 0 : i32
    %c0_i32_0 = arith.constant 0 : i32
    %c0_i32_1 = arith.constant 0 : i32
    return %c0_i32, %c0_i32_0 : i32, i32
  }
  func.func @transform_3(%arg0: i32) -> (i32, i32) {
    %c0_i32 = arith.constant 0 : i32
    %c0_i32_0 = arith.constant 0 : i32
    %c0_i32_1 = arith.constant 0 : i32
    return %c0_i32, %c0_i32_0 : i32, i32
  }
  func.func @transform_4(%arg0: i32) -> (i32, i32) {
    %c0_i32 = arith.constant 0 : i32
    %c0_i32_0 = arith.constant 0 : i32
    return %c0_i32, %arg0 : i32, i32
  }
}

</mosaic_0001>

<bundles_post_ra>
// kernel: tpu_custom_call.1
= control target key start
LH: loop header
LB: loop body
LE: loop exit
PB: predicated region body
PF: predicated region fallthrough
CT: control target
= control target key end

     0   :  { %10 = vsyncpa [#allocation4], 0  ;;  %s258_s0 = inlined_call_operand.<no memory space> [shape: f32[1], index: 0, kind: input, shape index: {}]   ;;  %s259_s1 = inlined_call_operand.hbm [shape: f32[8,16], index: 1, kind: input, shape index: {}]   ;;  %s260_s2 = inlined_call_operand.hbm [shape: f32[16,9], index: 2, kind: input, shape index: {}]   ;;  %s261_s3 = inlined_call_operand.vmem [shape: f32[1,16], index: 3, kind: input, shape index: {}]   ;;  %s262_s4 = inlined_call_operand.hbm [shape: f32[1,8], index: 4, kind: output, shape index: {}]  }
   0x1   :  { %11 = vsyncpa [#allocation7], 0 }
   0x2   :  { %12 = vsyncpa [#allocation5], 0  ;;  %s20_s17 = sshll.u32 %s259_s1, 4  ;;  %s212_s18 = smov [#allocation3]   ;;  %s21_s17 = int_to_ptr.hbm [resolvable:$true] %s20_s17 }
   0x3   :  { %s22_s19 = sshll.u32 %s212_s18, 4  ;;  %s30_s22 = sshll.u32 %s260_s2, 4  ;;  %s23_s19 = int_to_ptr.vmem [resolvable:$true] %s22_s19  ;;  %s31_s22 = int_to_ptr.hbm [resolvable:$true] %s30_s22 }
   0x4   :  { %25 = dma.hbm_to_vmem [thread:$0]  %s21_s17, 128, %s23_s19, [#allocation4]  }
   0x5   :  { %s213_s23 = smov [#allocation6]   ;;  %s214_s25 = smov 128  }
   0x6   :  { %s32_s24 = sshll.u32 %s213_s23, 4  ;;  %s215_s26 = smov 8   ;;  %s33_s24 = int_to_ptr.vmem [resolvable:$true] %s32_s24 }
   0x7   :  { %38 = dma.hbm_to_vmem [thread:$0]  %s31_s22, 256, %s33_s24, [#allocation7], %s214_s25, %s214_s25, %s215_s26  }
   0x8   :  { %206 = dma.done.wait [#allocation4], 128  }
   0x9   :  { %207 = vsyncadd [#allocation4], 4294967168 }
   0xa   :  { %208 = dma.done.wait [#allocation7], 256  }
   0xb   :  { %209 = vsyncadd [#allocation7], 4294967040  ;;  %v51_v0 = vld [vmem:[#allocation6 + $0x8] sm:$0xff]  ;;  %v50_v1 = vld [vmem:[#allocation6] sm:$0xff]  ;;  %vm52_vm0 = vcmask 130048   ;;  %vm77_vm1 = vcmask 64512   ;;  %v92_v12 = vstv %s258_s0  ;;  %v100_v18 = vlaneseq }
   0xc   :  { %70 = vmatpush.msra.mxu0 %v51_v0  ;;  %v49_v2 = vld [vmem:[#allocation3] sm:$0xff]  ;;  %v216_v10 = vmov 8   ;;  %s113_s6 = sshll.u32 %s262_s4, 4  ;;  %vm104_vm2 = vcmask 57344   ;;  %s114_s6 = int_to_ptr.hbm [resolvable:$true] %s113_s6 }
   0xd   :  { %v82_v4 = vmul.f32 %v49_v2, %v49_v2  ;;  %v133_v6 = vld [vmem:[%s261_s3] ss:$0 sm:$0xff]  ;;  %131 = vset.pattern.permute.xlu1 %v216_v10  ;;  %132 = vset.pattern.permute.xlu0 %v216_v10  ;;  %v101_v19 = vand.u32 127, %v100_v18  ;;  %s217_s3 = smov [#allocation8]  }
   0xe   :  { %71 = vmatpush.msra.mxu0 %v50_v1  ;;  %s111_s29 = sshll.u32 %s217_s3, 4  ;;  %s112_s29 = int_to_ptr.vmem [resolvable:$true] %s111_s29 }
   0xf   :  { %124 = vmatmul.msk.f32.vlgmr.msra.gmra.mxu0 %vm52_vm0, %v49_v2  ;;  %v87_v8 = vmul.f32 %v133_v6, %v82_v4 }
  0x11   :  { %v88_v9 = vsel %vm52_vm0, %v87_v8, 0.0 }
  0x8c   :  { %v73_v3 = vpop.f32.mrf.mxu0 }
  0x8d   :  { %v76_v5 = vmul.f32 %v73_v3, %v73_v3  ;;  %v93_v14 = vadd.f32 %v92_v12, %v73_v3 }
  0x8f   :  { %v78_v7 = vsel %vm77_vm1, %v76_v5, 0.0 }
  0x90   :  { %79 = vadd.xlane.f32.xlu0 %v78_v7 }
  0x98   :  { %89 = vadd.xlane.f32.xlu0 %v88_v9 }
 0x103   :  { %v80_v11 = vpop.xlane.xlu0 %79 }
 0x104   :  { %v81_v13 = vmul.f32 0.5, %v80_v11 }
 0x106   :  { %v94_v15 = vadd.f32 %v93_v14, %v81_v13 }
 0x10b   :  { %v90_v16 = vpop.xlane.xlu0 %89 }
 0x10c   :  { %v95_v17 = vsub.f32 %v94_v15, %v90_v16 }
 0x10e   :  { %98 = vperm.xlu1 %131, %v95_v17  }
 0x180   :  { %v99_v20 = vpop.permute.xlu1 %98 }
 0x181   :  { %v102_v21 = vperm.slane %v99_v20, %v101_v19 }
 0x183   :  { %105 = vst.msk [vmem:[#allocation8] sm:$0x1] %vm104_vm2, %v102_v21 }
 0x184   :  { %116 = dma.vmem_to_hbm [thread:$0]  %s112_s29, 16, %s114_s6, [#allocation5]  }
 0x185   :  { %210 = dma.done.wait [#allocation5], 16  }
 0x186   :  { %211 = vsyncadd [#allocation5], 4294967280 }
 0x187   :  { %121 = vsyncpa [#allocation4], 1 }
 0x188   :  { %122 = vsyncpa [#allocation7], 1 }
 0x189   :  { %123 = vsyncpa [#allocation5], 1 }

</bundles_post_ra>
